<compile_context>
chip_gen: v7x
topology: tpu7x:2x2x1
jax: 0.10.0
libtpu: 0.0.40
codegen_flags: <defaults>
</compile_context>

<pallas_src>
import jax
import jax.numpy as jnp
from jax.experimental import pallas as pl
from jax.experimental.pallas import tpu as pltpu

LANES = 128          # points per lane row
MAX_TILE_R = 512     # rows of 128 points per grid step -> 65536 points/step
                     # (3 * 512 * 128 * 4 B = 768 KiB in + 256 KiB out per
                     #  buffer; double-buffered ~2 MiB — safe on v5e/v6e/v7x)


def torus_sdf_kernel(center_ref, radii_ref, pts_ref, out_ref):
    # center_ref: (1, 3) SMEM  | radii_ref: (1, 2) SMEM
    # pts_ref:    (3, TILE_R, 128) VMEM  (x / y / z coordinate planes)
    # out_ref:    (TILE_R, 128) VMEM
    cx = center_ref[0, 0]
    cy = center_ref[0, 1]
    cz = center_ref[0, 2]
    r_major = radii_ref[0, 0]
    r_minor = radii_ref[0, 1]

    dx = pts_ref[0] - cx            # (TILE_R, 128), dense full vregs
    dy = pts_ref[1] - cy
    dz = pts_ref[2] - cz

    # norm over the first two coords of diff, minus major radius
    q0 = jnp.sqrt(dx * dx + dy * dy) - r_major
    # norm of (q0, dz), minus minor radius
    out_ref[...] = jnp.sqrt(q0 * q0 + dz * dz) - r_minor


def torus_sdf(points, center, radii):
    """points: any shape ending in 3. center: (1,3). radii: (1,2). Returns (N,1)."""
    pts = points.reshape(-1, 3).astype(jnp.float32)
    n = pts.shape[0]

    # Rows of 128 points; tile height is a multiple of 8 sublanes and shrinks
    # for small inputs so the grid collapses to a single step.
    rows = pl.cdiv(n, LANES)
    tile_r = min(MAX_TILE_R, ((rows + 7) // 8) * 8)
    rows_pad = pl.cdiv(rows, tile_r) * tile_r
    n_pad = rows_pad * LANES

    # Single layout pass: AoS (N, 3) -> SoA (3, rows_pad, 128).
    # (transpose + pad + reshape fuse into one XLA copy; no zeros/scatter.)
    pts_soa = jnp.pad(pts.T, ((0, 0), (0, n_pad - n))).reshape(3, rows_pad, LANES)

    grid = (rows_pad // tile_r,)

    out = pl.pallas_call(
        torus_sdf_kernel,
        out_shape=jax.ShapeDtypeStruct((rows_pad, LANES), jnp.float32),
        grid=grid,
        in_specs=[
            pl.BlockSpec((1, 3), lambda i: (0, 0),
                         memory_space=pltpu.MemorySpace.SMEM),
            pl.BlockSpec((1, 2), lambda i: (0, 0),
                         memory_space=pltpu.MemorySpace.SMEM),
            pl.BlockSpec((3, tile_r, LANES), lambda i: (0, i, 0)),
        ],
        out_specs=pl.BlockSpec((tile_r, LANES), lambda i: (i, 0)),
        compiler_params=pltpu.CompilerParams(
            dimension_semantics=("parallel",)),
        cost_estimate=pl.CostEstimate(
            flops=9 * n_pad, transcendentals=0, bytes_accessed=16 * n_pad),
    )(center.astype(jnp.float32), radii.astype(jnp.float32), pts_soa)

    return out.reshape(-1)[:n].reshape(n, 1)


def torus_sdf_ref(points, center, radii):
    pts = points.reshape(-1, 3).astype(jnp.float32)
    diff = pts - center
    q0 = jnp.linalg.norm(diff[..., :2], axis=-1) - radii[0, 0]
    q = jnp.stack([q0, diff[..., 2]], axis=-1)
    return (jnp.linalg.norm(q, axis=-1) - radii[0, 1])[..., None]


if __name__ == "__main__":
    key = jax.random.PRNGKey(0)
    # Small ray-points batch: (2, 16, 16, 3) -> 512 points after view(-1, 3)
    points = jax.random.normal(key, (2, 16, 16, 3), dtype=jnp.float32) * 2.0

    # Deterministic "cfg" parameters (module __init__ shapes: center (1,3), radii (1,2))
    center = jnp.array([[0.25, -0.1, 0.3]], dtype=jnp.float32)
    radii = jnp.array([[1.0, 0.25]], dtype=jnp.float32)

    out = torus_sdf(points, center, radii)
    out = jax.block_until_ready(out)

    ref = torus_sdf_ref(points, center, radii)
    assert out.shape == (512, 1), out.shape
    assert jnp.allclose(out, ref, atol=1e-5, rtol=1e-5), float(
        jnp.max(jnp.abs(out - ref)))

    # Also exercise a larger, multi-grid-step shape once for coverage.
    big_points = jax.random.normal(key, (4, 128, 257, 3), dtype=jnp.float32) * 2.0
    big_out = jax.block_until_ready(torus_sdf(big_points, center, radii))
    big_ref = torus_sdf_ref(big_points, center, radii)
    assert big_out.shape == (4 * 128 * 257, 1), big_out.shape
    assert jnp.allclose(big_out, big_ref, atol=1e-5, rtol=1e-5), float(
        jnp.max(jnp.abs(big_out - big_ref)))

    print("KERNEL_OK")
</pallas_src>

<mosaic_0001>
module attributes {stable_mosaic.version = 11 : i64} {
  func.func @torus_sdf_kernel(%arg0: i32, %arg1: memref<1x3xf32, #tpu.memory_space<smem>>, %arg2: memref<1x2xf32, #tpu.memory_space<smem>>, %arg3: memref<3x8x128xf32, #tpu.memory_space<vmem>>, %arg4: memref<8x128xf32, #tpu.memory_space<vmem>>) attributes {dimension_semantics = [#tpu.dimension_semantics<parallel>], iteration_bounds = array<i64: 1>, scalar_prefetch = 0 : i64, scratch_operands = 0 : i64, tpu.core_type = #tpu.core_type<tc>, window_params = [{transform_indices = @transform_0, window_bounds = array<i64: 1, 3>}, {transform_indices = @transform_1, window_bounds = array<i64: 1, 2>}, {transform_indices = @transform_2, window_bounds = array<i64: 3, 8, 128>}, {transform_indices = @transform_3, window_bounds = array<i64: 8, 128>}]} {
    %c0 = arith.constant 0 : index
    %c0_0 = arith.constant 0 : index
    %0 = memref.load %arg1[%c0, %c0_0] : memref<1x3xf32, #tpu.memory_space<smem>>
    %c0_1 = arith.constant 0 : index
    %c1 = arith.constant 1 : index
    %1 = memref.load %arg1[%c0_1, %c1] : memref<1x3xf32, #tpu.memory_space<smem>>
    %c0_2 = arith.constant 0 : index
    %c2 = arith.constant 2 : index
    %2 = memref.load %arg1[%c0_2, %c2] : memref<1x3xf32, #tpu.memory_space<smem>>
    %c0_3 = arith.constant 0 : index
    %c0_4 = arith.constant 0 : index
    %3 = memref.load %arg2[%c0_3, %c0_4] : memref<1x2xf32, #tpu.memory_space<smem>>
    %c0_5 = arith.constant 0 : index
    %c1_6 = arith.constant 1 : index
    %4 = memref.load %arg2[%c0_5, %c1_6] : memref<1x2xf32, #tpu.memory_space<smem>>
    %c0_7 = arith.constant 0 : index
    %c0_8 = arith.constant 0 : index
    %c0_9 = arith.constant 0 : index
    %5 = vector.load %arg3[%c0_7, %c0_8, %c0_9] : memref<3x8x128xf32, #tpu.memory_space<vmem>>, vector<1x8x128xf32>
    %6 = vector.shape_cast %5 : vector<1x8x128xf32> to vector<8x128xf32>
    %7 = vector.broadcast %0 : f32 to vector<8x128xf32>
    %8 = arith.subf %6, %7 : vector<8x128xf32>
    %c1_10 = arith.constant 1 : index
    %c0_11 = arith.constant 0 : index
    %c0_12 = arith.constant 0 : index
    %9 = vector.load %arg3[%c1_10, %c0_11, %c0_12] : memref<3x8x128xf32, #tpu.memory_space<vmem>>, vector<1x8x128xf32>
    %10 = vector.shape_cast %9 : vector<1x8x128xf32> to vector<8x128xf32>
    %11 = vector.broadcast %1 : f32 to vector<8x128xf32>
    %12 = arith.subf %10, %11 : vector<8x128xf32>
    %c2_13 = arith.constant 2 : index
    %c0_14 = arith.constant 0 : index
    %c0_15 = arith.constant 0 : index
    %13 = vector.load %arg3[%c2_13, %c0_14, %c0_15] : memref<3x8x128xf32, #tpu.memory_space<vmem>>, vector<1x8x128xf32>
    %14 = vector.shape_cast %13 : vector<1x8x128xf32> to vector<8x128xf32>
    %15 = vector.broadcast %2 : f32 to vector<8x128xf32>
    %16 = arith.subf %14, %15 : vector<8x128xf32>
    %17 = arith.mulf %8, %8 : vector<8x128xf32>
    %18 = arith.mulf %12, %12 : vector<8x128xf32>
    %19 = arith.addf %17, %18 : vector<8x128xf32>
    %20 = math.sqrt %19 : vector<8x128xf32>
    %21 = vector.broadcast %3 : f32 to vector<8x128xf32>
    %22 = arith.subf %20, %21 : vector<8x128xf32>
    %23 = arith.mulf %22, %22 : vector<8x128xf32>
    %24 = arith.mulf %16, %16 : vector<8x128xf32>
    %25 = arith.addf %23, %24 : vector<8x128xf32>
    %26 = math.sqrt %25 : vector<8x128xf32>
    %27 = vector.broadcast %4 : f32 to vector<8x128xf32>
    %28 = arith.subf %26, %27 : vector<8x128xf32>
    %c0_16 = arith.constant 0 : index
    %c0_17 = arith.constant 0 : index
    %29 = vector.load %arg4[%c0_16, %c0_17] : memref<8x128xf32, #tpu.memory_space<vmem>>, vector<8x128xf32>
    tpu.vector_store %arg4[%c0_16, %c0_17], %28 {strides = array<i32>} : memref<8x128xf32, #tpu.memory_space<vmem>>, vector<8x128xf32>,
    return
  }
  func.func @transform_0(%arg0: i32) -> (i32, i32) {
    %c0_i32 = arith.constant 0 : i32
    %c0_i32_0 = arith.constant 0 : i32
    %c0_i32_1 = arith.constant 0 : i32
    return %c0_i32, %c0_i32_0 : i32, i32
  }
  func.func @transform_1(%arg0: i32) -> (i32, i32) {
    %c0_i32 = arith.constant 0 : i32
    %c0_i32_0 = arith.constant 0 : i32
    %c0_i32_1 = arith.constant 0 : i32
    return %c0_i32, %c0_i32_0 : i32, i32
  }
  func.func @transform_2(%arg0: i32) -> (i32, i32, i32) {
    %c0_i32 = arith.constant 0 : i32
    %c0_i32_0 = arith.constant 0 : i32
    %c0_i32_1 = arith.constant 0 : i32
    return %c0_i32, %arg0, %c0_i32_0 : i32, i32, i32
  }
  func.func @transform_3(%arg0: i32) -> (i32, i32) {
    %c0_i32 = arith.constant 0 : i32
    %c0_i32_0 = arith.constant 0 : i32
    return %arg0, %c0_i32 : i32, i32
  }
}

</mosaic_0001>

<bundles_post_ra>
// kernel: tpu_custom_call.1
= control target key start
LH: loop header
LB: loop body
LE: loop exit
PB: predicated region body
PF: predicated region fallthrough
CT: control target
= control target key end

     0   :  { %8 = vsyncpa [#allocation5], 0  ;;  %s262_s0 = inlined_call_operand.hbm [shape: f32[1,3], index: 0, kind: input, shape index: {}]   ;;  %s263_s1 = inlined_call_operand.vmem [shape: f32[1,2], index: 1, kind: input, shape index: {}]   ;;  %s264_s2 = inlined_call_operand.hbm [shape: f32[3,8,128], index: 2, kind: input, shape index: {}]   ;;  %s265_s3 = inlined_call_operand.hbm [shape: f32[8,128], index: 3, kind: output, shape index: {}]  }
   0x1   :  { %9 = vsyncpa [#allocation6], 0 }
   0x2   :  { %10 = vsyncpa [#allocation3], 0 }
   0x3   :  { %11 = vsyncpa [#allocation4], 0  ;;  %s26_s14 = sshll.u32 %s263_s1, 4  ;;  %s123_s17 = scalar_lea.hbm %s262_s0, 16  ;;  %s27_s14 = int_to_ptr.vmem [resolvable:$true] %s26_s14 }
   0x4   :  { %p124_p0 = scmp.ne.s32.totalorder %s262_s0, %s123_s17  ;;  %p127_p1 = scmp.lt.u32.totalorder %s123_s17, %s262_s0 }
   0x6   :  { %p129_p2 = pnand %p127_p1, %p124_p0 }
   0x8   :  { %132 = shalt.err (!%p129_p2)
}
   0x9   :  { %s197_s22 = smov [#allocation2]   ;;  %s133_s1 = scalar_lea.vmem %s27_s14, 16 }
   0xa   :  { %19 = dma.hbm_to_smem %s262_s0, 16, %s197_s22, [#allocation5]  }
   0xb   :  { %p134_p3 = scmp.ne.s32.totalorder %s27_s14, %s133_s1  ;;  %p138_p4 = scmp.lt.s32.totalorder %s27_s14, %s27_s14 }
   0xc   :  { %p139_p5 = scmp.lt.s32.totalorder %s133_s1, %s133_s1 }
   0xe   :  { %p140_p6 = por %p139_p5, %p138_p4 }
  0x10   :  { %p141_p7 = pnand %p140_p6, %p134_p3 }
  0x12   :  { %144 = shalt.err (!%p141_p7)
}
  0x13   :  { %s198_s25 = smov [#allocation7]   ;;  %s199_s26 = smov [#allocation8]  }
  0x14   :  { %29 = dma.vmem_to_smem %s27_s14, 16, %s198_s25, [#allocation6]  }
  0x15   :  { %s35_s27 = sshll.u32 %s199_s26, 4  ;;  %s145_s30 = scalar_lea.hbm %s264_s2, 384  ;;  %s36_s27 = int_to_ptr.vmem [resolvable:$true] %s35_s27 }
  0x16   :  { %p146_p8 = scmp.ne.s32.totalorder %s264_s2, %s145_s30  ;;  %p149_p9 = scmp.lt.u32.totalorder %s145_s30, %s264_s2 }
  0x18   :  { %p151_p10 = pnand %p149_p9, %p146_p8 }
  0x1a   :  { %154 = shalt.err (!%p151_p10)
}
  0x1b   :  { %s155_s7 = scalar_lea.vmem %s36_s27, 384  ;;  %p160_p12 = scmp.lt.s32.totalorder %s36_s27, %s36_s27 }
  0x1c   :  { %p156_p11 = scmp.ne.s32.totalorder %s36_s27, %s155_s7  ;;  %p161_p13 = scmp.lt.s32.totalorder %s155_s7, %s155_s7 }
  0x1e   :  { %p162_p0 = por %p161_p13, %p160_p12 }
  0x20   :  { %p163_p1 = pnand %p162_p0, %p156_p11 }
  0x22   :  { %166 = shalt.err (!%p163_p1)
}
  0x23   :  { %s200_s8 = smov 128   ;;  %s201_s9 = smov 8  }
  0x24   :  { %41 = dma.hbm_to_vmem [thread:$0]  %s264_s2, 384, %s36_s27, [#allocation3], %s200_s8, %s200_s8, %s201_s9  }
  0x25   :  { %189 = dma.done.wait [#allocation5], 16  }
  0x26   :  { %190 = vsyncadd [#allocation5], 4294967280 }
  0x27   :  { %191 = dma.done.wait [#allocation6], 16  }
  0x28   :  { %192 = vsyncadd [#allocation6], 4294967280 }
  0x29   :  { %193 = dma.done.wait [#allocation3], 384  }
  0x2a   :  { %194 = vsyncadd [#allocation3], 4294966912 }
  0x2b   :  { %51 = sfence }
  0x2c   :  { %s52_s12 = sld [smem:[#allocation2]]  ;;  %s110_s13 = sld [smem:[#allocation2 + $0x1]]  ;;  %v57_v0 = vld [vmem:[#allocation8] sm:$0xff]  ;;  %v61_v1 = vld [vmem:[#allocation8 + $0x8] sm:$0xff]  ;;  %v65_v9 = vld [vmem:[#allocation8 + $0x10] sm:$0xff] }
  0x2d   :  { %s111_s14 = sld [smem:[#allocation2 + $0x2]]  ;;  %s55_s2 = sld [smem:[#allocation7]] }
  0x2e   :  { %s112_s15 = sld [smem:[#allocation7 + $0x1]]  ;;  %s202_s16 = smov [#allocation9]  }
  0x2f   :  { %s99_s17 = sshll.u32 %s202_s16, 4  ;;  %s100_s17 = int_to_ptr.vmem [resolvable:$true] %s99_s17 }
  0x30   :  { %s167_s18 = scalar_lea.vmem %s100_s17, 128  ;;  %p172_p3 = scmp.lt.s32.totalorder %s100_s17, %s100_s17 }
  0x31   :  { %p168_p2 = scmp.ne.s32.totalorder %s100_s17, %s167_s18  ;;  %p173_p4 = scmp.lt.s32.totalorder %s167_s18, %s167_s18 }
  0x32   :  { %v58_v2 = vstv %s52_s12  ;;  %v62_v3 = vstv %s110_s13 }
  0x33   :  { %v59_v4 = vsub.f32 %v57_v0, %v58_v2  ;;  %v63_v5 = vsub.f32 %v61_v1, %v62_v3  ;;  %v66_v10 = vstv %s111_s14  ;;  %v78_v15 = vstv %s55_s2  ;;  %p174_p5 = por %p173_p4, %p172_p3 }
  0x34   :  { %v67_v13 = vsub.f32 %v65_v9, %v66_v10  ;;  %v90_v25 = vstv %s112_s15 }
  0x35   :  { %v68_v6 = vmul.f32 %v59_v4, %v59_v4  ;;  %v69_v7 = vmul.f32 %v63_v5, %v63_v5  ;;  %p175_p6 = pnand %p174_p5, %p168_p2 }
  0x36   :  { %v81_v19 = vmul.f32 %v67_v13, %v67_v13 }
  0x37   :  { %v70_v8 = vadd.f32 %v69_v7, %v68_v6 }
  0x39   :  { %119 = vrsqrt.f32 %v70_v8  ;;  %vm73_vm0 = vcmp.eq.f32.partialorder %v70_v8, inf  ;;  %v76_v12 = vand.u32 2147483648, %v70_v8  ;;  %vm75_vm1 = vcmp.eq.f32.partialorder %v70_v8, 0.0 }
  0x43   :  { %v120_v11 = vpop.eup %119 }
  0x44   :  { %v72_v14 = vmul.f32 %v120_v11, %v70_v8 }
  0x46   :  { %v74_v16 = vsel %vm73_vm0, %v70_v8, %v72_v14 }
  0x47   :  { %v77_v17 = vsel %vm75_vm1, %v76_v12, %v74_v16 }
  0x48   :  { %v79_v18 = vsub.f32 %v77_v17, %v78_v15 }
  0x4a   :  { %v80_v20 = vmul.f32 %v79_v18, %v79_v18 }
  0x4c   :  { %v82_v21 = vadd.f32 %v81_v19, %v80_v20 }
  0x4e   :  { %121 = vrsqrt.f32 %v82_v21  ;;  %vm85_vm2 = vcmp.eq.f32.partialorder %v82_v21, inf  ;;  %v88_v23 = vand.u32 2147483648, %v82_v21  ;;  %vm87_vm3 = vcmp.eq.f32.partialorder %v82_v21, 0.0 }
  0x58   :  { %v122_v22 = vpop.eup %121 }
  0x59   :  { %v84_v24 = vmul.f32 %v122_v22, %v82_v21 }
  0x5b   :  { %v86_v26 = vsel %vm85_vm2, %v82_v21, %v84_v24 }
  0x5c   :  { %v89_v27 = vsel %vm87_vm3, %v88_v23, %v86_v26 }
  0x5d   :  { %v91_v28 = vsub.f32 %v89_v27, %v90_v25 }
  0x5f   :  { %92 = vst [vmem:[#allocation9] sm:$0xff] %v91_v28 }
  0x60   :  { %178 = shalt.err (!%p175_p6)
}
  0x61   :  { %s179_s21 = scalar_lea.hbm %s265_s3, 128 }
  0x62   :  { %p180_p7 = scmp.ne.s32.totalorder %s265_s3, %s179_s21  ;;  %p183_p8 = scmp.lt.u32.totalorder %s179_s21, %s265_s3 }
  0x64   :  { %p185_p9 = pnand %p183_p8, %p180_p7 }
  0x66   :  { %188 = shalt.err (!%p185_p9)
}
  0x67   :  { %102 = dma.vmem_to_hbm [thread:$0]  %s100_s17, 128, %s265_s3, [#allocation4]  }
  0x68   :  { %195 = dma.done.wait [#allocation4], 128  }
  0x69   :  { %196 = vsyncadd [#allocation4], 4294967168 }
  0x6a   :  { %106 = vsyncpa [#allocation3], 1 }
  0x6b   :  { %107 = vsyncpa [#allocation4], 1 }
  0x6c   :  { %108 = vsyncpa [#allocation5], 1 }
  0x6d   :  { %109 = vsyncpa [#allocation6], 1 }

</bundles_post_ra>
